<compile_context>
chip_gen: v7x
topology: tpu7x:2x2x1
jax: 0.10.0
libtpu: 0.0.40
codegen_flags: <defaults>
</compile_context>

<pallas_src>
import functools

import jax
import jax.numpy as jnp
from jax.experimental import pallas as pl
from jax.experimental.pallas import tpu as pltpu


def _round_up(x, m):
    return (x + m - 1) // m * m


# ---------------------------------------------------------------------------
# Kernel A: conv-as-matmul + 2x2 max-pool + bias + sigmoid
#   p_ref: [4, TR, K]  (4 = positions inside each 2x2 pool window,
#                       TR = tile of pooled output positions, K = C*KH*KW)
#   w_ref: [K, F]  conv filters (flattened OIHW, transposed)
#   b_ref: [1, F]
#   o_ref: [TR, F] = sigmoid(maxpool(conv(x)) + b)
# ---------------------------------------------------------------------------
def conv_pool_kernel(p_ref, w_ref, b_ref, o_ref):
    four, tr, k = p_ref.shape
    # Fuse the 4 pool-position matmuls into a single long-LHS MXU dot.
    p = p_ref[...].reshape(four * tr, k)
    s = jnp.dot(p, w_ref[...], preferred_element_type=jnp.float32)
    # Static, sublane-aligned (tr is a multiple of 8) slices -> 4-way max (VPU).
    pooled = jnp.maximum(
        jnp.maximum(s[0 * tr:1 * tr], s[1 * tr:2 * tr]),
        jnp.maximum(s[2 * tr:3 * tr], s[3 * tr:4 * tr]),
    )
    z = pooled + b_ref[...]
    # sigmoid(z) = 1 / (1 + exp(-z)); exp + approx reciprocal both run on EUP.
    o_ref[...] = pl.reciprocal(1.0 + jnp.exp(-z), approx=True)


# ---------------------------------------------------------------------------
# Kernel B: FC(sigmoid) -> FC -> row-wise softmax (class dim padded to 128)
#   h_ref: [TB, Din], w1_ref: [Din, H], b1_ref: [1, H]
#   w2_ref: [H, Cp], b2_ref: [1, Cp] (padding logits get -1e30 -> exp == 0)
#   o_ref: [TB, Cp]
# ---------------------------------------------------------------------------
def mlp_head_kernel(h_ref, w1_ref, b1_ref, w2_ref, b2_ref, o_ref):
    z1 = jnp.dot(h_ref[...], w1_ref[...], preferred_element_type=jnp.float32) + b1_ref[...]
    a1 = pl.reciprocal(1.0 + jnp.exp(-z1), approx=True)
    logits = jnp.dot(a1, w2_ref[...], preferred_element_type=jnp.float32) + b2_ref[...]
    m = jnp.max(logits, axis=-1, keepdims=True)
    e = jnp.exp(logits - m)
    o_ref[...] = e * pl.reciprocal(jnp.sum(e, axis=-1, keepdims=True), approx=True)


# ---------------------------------------------------------------------------
# Wrapper: PyTorch-style NCHW in, softmax probabilities out.
# ---------------------------------------------------------------------------
@functools.partial(jax.jit, static_argnames=("kh", "kw"))
def network_forward(x, conv_w, conv_b, fc1_w, fc1_b, fc2_w, fc2_b, *, kh=5, kw=5):
    N, C, H, W = x.shape
    F = conv_w.shape[0]
    OH, OW = H - kh + 1, W - kw + 1           # valid conv output
    PH, PW = OH // 2, OW // 2                 # 2x2 max-pool output (floor)
    K = C * kh * kw
    R = N * PH * PW
    Din = PH * PW * F
    Hd = fc1_w.shape[0]
    NCLS = fc2_w.shape[0]

    # ---- glue: im2col (pure data movement), rows ordered (n, ph, pw),
    #      the 4 in-window pool positions split into a leading axis. ----------
    cols = jnp.stack(
        [x[:, :, i:i + OH, j:j + OW] for i in range(kh) for j in range(kw)],
        axis=-1,
    )
    cols = jnp.transpose(cols, (0, 2, 3, 1, 4)).reshape(N, OH, OW, K)
    cols = cols[:, :2 * PH, :2 * PW, :]        # floor-pooling crop (no-op if even)
    cols = cols.reshape(N, PH, 2, PW, 2, K)
    patches = jnp.transpose(cols, (2, 4, 0, 1, 3, 5)).reshape(4, R, K)

    # Row tile: multiple of 8; <=1024 keeps double-buffered input tiles tiny
    # (2 * 4*TR*K*4B ≈ 0.8 MiB at K=25) even under v7x's 64 MiB VMEM, while
    # amortizing the ~0.35 µs per-grid-step overhead.
    TR = min(1024, _round_up(R, 8))
    Rp = _round_up(R, TR)
    if Rp != R:
        patches = jnp.pad(patches, ((0, 0), (0, Rp - R), (0, 0)))

    wconv = conv_w.reshape(F, K).T                       # [K, F]
    bconv = conv_b.reshape(1, F)

    cost_a = pl.CostEstimate(
        flops=2 * 4 * Rp * K * F + 6 * Rp * F,
        transcendentals=2 * Rp * F,
        bytes_accessed=4 * (4 * Rp * K + K * F + F + Rp * F),
    )
    pooled = pl.pallas_call(
        conv_pool_kernel,
        out_shape=jax.ShapeDtypeStruct((Rp, F), jnp.float32),
        grid=(Rp // TR,),
        in_specs=[
            pl.BlockSpec((4, TR, K), lambda b: (0, b, 0)),
            pl.BlockSpec((K, F), lambda b: (0, 0)),      # VMEM-resident weights
            pl.BlockSpec((1, F), lambda b: (0, 0)),
        ],
        out_specs=pl.BlockSpec((TR, F), lambda b: (b, 0)),
        compiler_params=pltpu.CompilerParams(dimension_semantics=("parallel",)),
        cost_estimate=cost_a,
    )(patches, wconv, bconv)

    # ---- glue: flatten is a FREE (contiguous) reshape — no activation
    #      transpose: the fc1 weight columns are permuted instead. ------------
    flat = pooled[:R].reshape(N, Din)
    w1 = jnp.transpose(fc1_w.reshape(Hd, F, PH, PW), (0, 2, 3, 1)).reshape(Hd, Din).T
    b1 = fc1_b.reshape(1, Hd)

    # Lane-dense head: pad class dim to a multiple of 128; padded logits get a
    # -1e30 bias so exp() underflows to 0 and the softmax is unchanged.
    Cp = _round_up(NCLS, 128)
    w2 = jnp.pad(fc2_w.T, ((0, 0), (0, Cp - NCLS)))
    b2 = jnp.pad(fc2_b.reshape(1, NCLS), ((0, 0), (0, Cp - NCLS)),
                 constant_values=-1e30)

    # Batch tile: 256 rows * Din(<=~3K) f32, double-buffered, stays well under
    # the default scoped-VMEM limits on all of v5e/v6e/v7x.
    TB = min(256, _round_up(N, 8))
    Np = _round_up(N, TB)
    if Np != N:
        flat = jnp.pad(flat, ((0, Np - N), (0, 0)))

    cost_b = pl.CostEstimate(
        flops=2 * Np * (Din * Hd + Hd * Cp),
        transcendentals=Np * (2 * Hd + Cp + 1),
        bytes_accessed=4 * (Np * Din + Din * Hd + Hd + Hd * Cp + Cp + Np * Cp),
    )
    probs = pl.pallas_call(
        mlp_head_kernel,
        out_shape=jax.ShapeDtypeStruct((Np, Cp), jnp.float32),
        grid=(Np // TB,),
        in_specs=[
            pl.BlockSpec((TB, Din), lambda b: (b, 0)),
            pl.BlockSpec((Din, Hd), lambda b: (0, 0)),
            pl.BlockSpec((1, Hd), lambda b: (0, 0)),
            pl.BlockSpec((Hd, Cp), lambda b: (0, 0)),
            pl.BlockSpec((1, Cp), lambda b: (0, 0)),
        ],
        out_specs=pl.BlockSpec((TB, Cp), lambda b: (b, 0)),
        compiler_params=pltpu.CompilerParams(dimension_semantics=("parallel",)),
        cost_estimate=cost_b,
    )(flat, w1, b1, w2, b2)

    return probs[:N, :NCLS]


# ---------------------------------------------------------------------------
# Pure-JAX reference (independent ops) used only for verification.
# ---------------------------------------------------------------------------
def reference_forward(x, conv_w, conv_b, fc1_w, fc1_b, fc2_w, fc2_b):
    N = x.shape[0]
    conv = jax.lax.conv_general_dilated(
        x, conv_w, (1, 1), "VALID", dimension_numbers=("NCHW", "OIHW", "NCHW")
    ) + conv_b[None, :, None, None]
    pooled = jax.lax.reduce_window(
        conv, -jnp.inf, jax.lax.max, (1, 1, 2, 2), (1, 1, 2, 2), "VALID"
    )
    a = jax.nn.sigmoid(pooled)
    flat = a.reshape(N, -1)
    a1 = jax.nn.sigmoid(flat @ fc1_w.T + fc1_b)
    logits = a1 @ fc2_w.T + fc2_b
    return jax.nn.softmax(logits, axis=-1)


if __name__ == "__main__":
    # Small shapes consistent with the module's forward (NCHW, 1 input channel).
    N, C, H, W = 2, 1, 16, 16
    F, KH, KW = 4, 5, 5
    PH, PW = (H - KH + 1) // 2, (W - KW + 1) // 2
    HID, NCLS = 32, 10

    key = jax.random.PRNGKey(0)
    k = jax.random.split(key, 7)
    x = jax.random.normal(k[0], (N, C, H, W), jnp.float32)

    conv_w = jax.random.normal(k[1], (F, C, KH, KW), jnp.float32) / (C * KH * KW) ** 0.5
    conv_b = jax.random.normal(k[2], (F,), jnp.float32) * 0.1
    fc1_w = jax.random.normal(k[3], (HID, F * PH * PW), jnp.float32) / (F * PH * PW) ** 0.5
    fc1_b = jax.random.normal(k[4], (HID,), jnp.float32) * 0.1
    fc2_w = jax.random.normal(k[5], (NCLS, HID), jnp.float32) / HID ** 0.5
    fc2_b = jax.random.normal(k[6], (NCLS,), jnp.float32) * 0.1

    out = network_forward(x, conv_w, conv_b, fc1_w, fc1_b, fc2_w, fc2_b)
    out = jax.block_until_ready(out)

    ref = reference_forward(x, conv_w, conv_b, fc1_w, fc1_b, fc2_w, fc2_b)
    assert out.shape == (N, NCLS), out.shape
    # approx-reciprocal (EUP) sigmoid/softmax introduces ~1e-3-level deviation,
    # so the check tolerance is relaxed vs exact-f32.
    assert jnp.allclose(out, ref, atol=1e-2, rtol=1e-2), (out, ref)
    assert jnp.allclose(jnp.sum(out, axis=1), 1.0, atol=1e-2)
    print("KERNEL_OK")
</pallas_src>

<mosaic_0001>
module attributes {stable_mosaic.version = 11 : i64} {
  func.func @conv_pool_kernel(%arg0: i32, %arg1: memref<4x72x25xf32, #tpu.memory_space<vmem>>, %arg2: memref<25x4xf32, #tpu.memory_space<vmem>>, %arg3: memref<1x4xf32, #tpu.memory_space<vmem>>, %arg4: memref<72x4xf32, #tpu.memory_space<vmem>>) attributes {dimension_semantics = [#tpu.dimension_semantics<parallel>], iteration_bounds = array<i64: 1>, scalar_prefetch = 0 : i64, scratch_operands = 0 : i64, tpu.core_type = #tpu.core_type<tc>, window_params = [{transform_indices = @transform_0, window_bounds = array<i64: 4, 72, 25>}, {pipeline_mode = #tpu.pipeline_mode<synchronous>, transform_indices = @transform_1, window_bounds = array<i64: 25, 4>}, {pipeline_mode = #tpu.pipeline_mode<synchronous>, transform_indices = @transform_2, window_bounds = array<i64: 1, 4>}, {transform_indices = @transform_3, window_bounds = array<i64: 72, 4>}]} {
    %c0 = arith.constant 0 : index
    %c0_0 = arith.constant 0 : index
    %c0_1 = arith.constant 0 : index
    %0 = vector.load %arg1[%c0, %c0_0, %c0_1] : memref<4x72x25xf32, #tpu.memory_space<vmem>>, vector<4x72x25xf32>
    %1 = vector.shape_cast %0 : vector<4x72x25xf32> to vector<288x25xf32>
    %c0_2 = arith.constant 0 : index
    %c0_3 = arith.constant 0 : index
    %2 = vector.load %arg2[%c0_2, %c0_3] : memref<25x4xf32, #tpu.memory_space<vmem>>, vector<25x4xf32>
    %cst = arith.constant dense<0.000000e+00> : vector<288x4xf32>
    %3 = tpu.matmul %1, %2, %cst {dimension_numbers = #tpu.dot_dimension_numbers<[1], [0], [0], [1], [0, 0, 1, 1], [], []>} : vector<288x25xf32>, vector<25x4xf32>, vector<288x4xf32> -> vector<288x4xf32>
    %4 = vector.extract_strided_slice %3 {offsets = [0, 0], sizes = [72, 4], strides = [1, 1]} : vector<288x4xf32> to vector<72x4xf32>
    %5 = vector.extract_strided_slice %3 {offsets = [72, 0], sizes = [72, 4], strides = [1, 1]} : vector<288x4xf32> to vector<72x4xf32>
    %6 = arith.maximumf %4, %5 : vector<72x4xf32>
    %7 = vector.extract_strided_slice %3 {offsets = [144, 0], sizes = [72, 4], strides = [1, 1]} : vector<288x4xf32> to vector<72x4xf32>
    %8 = vector.extract_strided_slice %3 {offsets = [216, 0], sizes = [72, 4], strides = [1, 1]} : vector<288x4xf32> to vector<72x4xf32>
    %9 = arith.maximumf %7, %8 : vector<72x4xf32>
    %10 = arith.maximumf %6, %9 : vector<72x4xf32>
    %c0_4 = arith.constant 0 : index
    %c0_5 = arith.constant 0 : index
    %11 = vector.load %arg3[%c0_4, %c0_5] : memref<1x4xf32, #tpu.memory_space<vmem>>, vector<1x4xf32>
    %12 = vector.broadcast %11 : vector<1x4xf32> to vector<72x4xf32>
    %13 = arith.addf %10, %12 : vector<72x4xf32>
    %cst_6 = arith.constant 0.000000e+00 : f32
    %14 = vector.broadcast %cst_6 : f32 to vector<72x4xf32>
    %15 = arith.subf %14, %13 : vector<72x4xf32>
    %16 = math.exp %15 : vector<72x4xf32>
    %cst_7 = arith.constant 1.000000e+00 : f32
    %17 = vector.broadcast %cst_7 : f32 to vector<72x4xf32>
    %18 = arith.addf %17, %16 : vector<72x4xf32>
    %19 = tpu.reciprocal %18 {approx = true} : vector<72x4xf32> -> vector<72x4xf32>
    %c0_8 = arith.constant 0 : index
    %c0_9 = arith.constant 0 : index
    %20 = vector.load %arg4[%c0_8, %c0_9] : memref<72x4xf32, #tpu.memory_space<vmem>>, vector<72x4xf32>
    tpu.vector_store %arg4[%c0_8, %c0_9], %19 {strides = array<i32>} : memref<72x4xf32, #tpu.memory_space<vmem>>, vector<72x4xf32>,
    return
  }
  func.func @transform_0(%arg0: i32) -> (i32, i32, i32) {
    %c0_i32 = arith.constant 0 : i32
    %c0_i32_0 = arith.constant 0 : i32
    %c0_i32_1 = arith.constant 0 : i32
    return %c0_i32, %arg0, %c0_i32_0 : i32, i32, i32
  }
  func.func @transform_1(%arg0: i32) -> (i32, i32) {
    %c0_i32 = arith.constant 0 : i32
    %c0_i32_0 = arith.constant 0 : i32
    %c0_i32_1 = arith.constant 0 : i32
    return %c0_i32, %c0_i32_0 : i32, i32
  }
  func.func @transform_2(%arg0: i32) -> (i32, i32) {
    %c0_i32 = arith.constant 0 : i32
    %c0_i32_0 = arith.constant 0 : i32
    %c0_i32_1 = arith.constant 0 : i32
    return %c0_i32, %c0_i32_0 : i32, i32
  }
  func.func @transform_3(%arg0: i32) -> (i32, i32) {
    %c0_i32 = arith.constant 0 : i32
    %c0_i32_0 = arith.constant 0 : i32
    return %arg0, %c0_i32 : i32, i32
  }
}

module attributes {stable_mosaic.version = 11 : i64} {
  func.func @mlp_head_kernel(%arg0: i32, %arg1: memref<8x144xf32, #tpu.memory_space<vmem>>, %arg2: memref<144x32xf32, #tpu.memory_space<vmem>>, %arg3: memref<1x32xf32, #tpu.memory_space<vmem>>, %arg4: memref<32x128xf32, #tpu.memory_space<vmem>>, %arg5: memref<1x128xf32, #tpu.memory_space<vmem>>, %arg6: memref<8x128xf32, #tpu.memory_space<vmem>>) attributes {dimension_semantics = [#tpu.dimension_semantics<parallel>], iteration_bounds = array<i64: 1>, scalar_prefetch = 0 : i64, scratch_operands = 0 : i64, tpu.core_type = #tpu.core_type<tc>, window_params = [{transform_indices = @transform_0, window_bounds = array<i64: 8, 144>}, {pipeline_mode = #tpu.pipeline_mode<synchronous>, transform_indices = @transform_1, window_bounds = array<i64: 144, 32>}, {pipeline_mode = #tpu.pipeline_mode<synchronous>, transform_indices = @transform_2, window_bounds = array<i64: 1, 32>}, {pipeline_mode = #tpu.pipeline_mode<synchronous>, transform_indices = @transform_3, window_bounds = array<i64: 32, 128>}, {pipeline_mode = #tpu.pipeline_mode<synchronous>, transform_indices = @transform_4, window_bounds = array<i64: 1, 128>}, {transform_indices = @transform_5, window_bounds = array<i64: 8, 128>}]} {
    %c0 = arith.constant 0 : index
    %c0_0 = arith.constant 0 : index
    %0 = vector.load %arg1[%c0, %c0_0] : memref<8x144xf32, #tpu.memory_space<vmem>>, vector<8x144xf32>
    %c0_1 = arith.constant 0 : index
    %c0_2 = arith.constant 0 : index
    %1 = vector.load %arg2[%c0_1, %c0_2] : memref<144x32xf32, #tpu.memory_space<vmem>>, vector<144x32xf32>
    %cst = arith.constant dense<0.000000e+00> : vector<8x32xf32>
    %2 = tpu.matmul %0, %1, %cst {dimension_numbers = #tpu.dot_dimension_numbers<[1], [0], [0], [1], [0, 0, 1, 1], [], []>} : vector<8x144xf32>, vector<144x32xf32>, vector<8x32xf32> -> vector<8x32xf32>
    %c0_3 = arith.constant 0 : index
    %c0_4 = arith.constant 0 : index
    %3 = vector.load %arg3[%c0_3, %c0_4] : memref<1x32xf32, #tpu.memory_space<vmem>>, vector<1x32xf32>
    %4 = vector.broadcast %3 : vector<1x32xf32> to vector<8x32xf32>
    %5 = arith.addf %2, %4 : vector<8x32xf32>
    %cst_5 = arith.constant 0.000000e+00 : f32
    %6 = vector.broadcast %cst_5 : f32 to vector<8x32xf32>
    %7 = arith.subf %6, %5 : vector<8x32xf32>
    %8 = math.exp %7 : vector<8x32xf32>
    %cst_6 = arith.constant 1.000000e+00 : f32
    %9 = vector.broadcast %cst_6 : f32 to vector<8x32xf32>
    %10 = arith.addf %9, %8 : vector<8x32xf32>
    %11 = tpu.reciprocal %10 {approx = true} : vector<8x32xf32> -> vector<8x32xf32>
    %c0_7 = arith.constant 0 : index
    %c0_8 = arith.constant 0 : index
    %12 = vector.load %arg4[%c0_7, %c0_8] : memref<32x128xf32, #tpu.memory_space<vmem>>, vector<32x128xf32>
    %cst_9 = arith.constant dense<0.000000e+00> : vector<8x128xf32>
    %13 = tpu.matmul %11, %12, %cst_9 {dimension_numbers = #tpu.dot_dimension_numbers<[1], [0], [0], [1], [0, 0, 1, 1], [], []>} : vector<8x32xf32>, vector<32x128xf32>, vector<8x128xf32> -> vector<8x128xf32>
    %c0_10 = arith.constant 0 : index
    %c0_11 = arith.constant 0 : index
    %14 = vector.load %arg5[%c0_10, %c0_11] : memref<1x128xf32, #tpu.memory_space<vmem>>, vector<1x128xf32>
    %15 = vector.broadcast %14 : vector<1x128xf32> to vector<8x128xf32>
    %16 = arith.addf %13, %15 : vector<8x128xf32>
    %cst_12 = arith.constant dense<0xFF800000> : vector<8xf32>
    %17 = vector.multi_reduction <maximumf>, %16, %cst_12 [1] : vector<8x128xf32> to vector<8xf32>
    %18 = vector.shape_cast %17 : vector<8xf32> to vector<8x1xf32>
    %19 = vector.broadcast %18 : vector<8x1xf32> to vector<8x128xf32>
    %20 = arith.subf %16, %19 : vector<8x128xf32>
    %21 = math.exp %20 : vector<8x128xf32>
    %cst_13 = arith.constant dense<0.000000e+00> : vector<8xf32>
    %22 = vector.multi_reduction <add>, %21, %cst_13 [1] : vector<8x128xf32> to vector<8xf32>
    %23 = vector.shape_cast %22 : vector<8xf32> to vector<8x1xf32>
    %24 = tpu.reciprocal %23 {approx = true} : vector<8x1xf32> -> vector<8x1xf32>
    %25 = vector.broadcast %24 : vector<8x1xf32> to vector<8x128xf32>
    %26 = arith.mulf %21, %25 : vector<8x128xf32>
    %c0_14 = arith.constant 0 : index
    %c0_15 = arith.constant 0 : index
    %27 = vector.load %arg6[%c0_14, %c0_15] : memref<8x128xf32, #tpu.memory_space<vmem>>, vector<8x128xf32>
    tpu.vector_store %arg6[%c0_14, %c0_15], %26 {strides = array<i32>} : memref<8x128xf32, #tpu.memory_space<vmem>>, vector<8x128xf32>,
    return
  }
  func.func @transform_0(%arg0: i32) -> (i32, i32) {
    %c0_i32 = arith.constant 0 : i32
    %c0_i32_0 = arith.constant 0 : i32
    return %arg0, %c0_i32 : i32, i32
  }
  func.func @transform_1(%arg0: i32) -> (i32, i32) {
    %c0_i32 = arith.constant 0 : i32
    %c0_i32_0 = arith.constant 0 : i32
    %c0_i32_1 = arith.constant 0 : i32
    return %c0_i32, %c0_i32_0 : i32, i32
  }
  func.func @transform_2(%arg0: i32) -> (i32, i32) {
    %c0_i32 = arith.constant 0 : i32
    %c0_i32_0 = arith.constant 0 : i32
    %c0_i32_1 = arith.constant 0 : i32
    return %c0_i32, %c0_i32_0 : i32, i32
  }
  func.func @transform_3(%arg0: i32) -> (i32, i32) {
    %c0_i32 = arith.constant 0 : i32
    %c0_i32_0 = arith.constant 0 : i32
    %c0_i32_1 = arith.constant 0 : i32
    return %c0_i32, %c0_i32_0 : i32, i32
  }
  func.func @transform_4(%arg0: i32) -> (i32, i32) {
    %c0_i32 = arith.constant 0 : i32
    %c0_i32_0 = arith.constant 0 : i32
    %c0_i32_1 = arith.constant 0 : i32
    return %c0_i32, %c0_i32_0 : i32, i32
  }
  func.func @transform_5(%arg0: i32) -> (i32, i32) {
    %c0_i32 = arith.constant 0 : i32
    %c0_i32_0 = arith.constant 0 : i32
    return %arg0, %c0_i32 : i32, i32
  }
}

</mosaic_0001>

<bundles_post_ra>
// kernel: network_forward.3
= control target key start
LH: loop header
LB: loop body
LE: loop exit
PB: predicated region body
PF: predicated region fallthrough
CT: control target
= control target key end

     0   :  { %v289_v0 = vmov 0.0|0.0   ;;  %vm47_vm0 = vcmask 130048   ;;  %vm290_vm1 = vmmov 0   ;;  %v291_v33 = vmov 0.0   ;;  %s414_s1 = inlined_call_operand.vmem [shape: f32[144,32], index: 1, kind: input, shape index: {}]   ;;  %s415_s0 = inlined_call_operand.vmem [shape: f32[8,144], index: 0, kind: input, shape index: {}]   ;;  %s416_s3 = inlined_call_operand.vmem [shape: f32[32,128], index: 3, kind: input, shape index: {}]   ;;  %s417_s2 = inlined_call_operand.vmem [shape: f32[1,32], index: 2, kind: input, shape index: {}]   ;;  %s418_s4 = inlined_call_operand.vmem [shape: f32[1,128], index: 4, kind: input, shape index: {}]   ;;  %s419_s5 = inlined_call_operand.vmem [shape: f32[8,128], index: 5, kind: output, shape index: {}]  }
   0x1   :  { %245 = vmatprep.subr.bf16.mxu0 %v289_v0  ;;  %v22_v1 = vld [vmem:[%s414_s1] sm:$0xff]  ;;  %v23_v2 = vld [vmem:[%s414_s1 + $0x8] sm:$0xff]  ;;  %v24_v3 = vld [vmem:[%s414_s1 + $0x10] sm:$0xff]  ;;  %272 = vmatprep.subr.bf16.mxu1 %v289_v0  ;;  %vm137_vm2 = vcmask 261120  }
   0x2   :  { %v246_v4 = vpack.c.bf16 %v23_v2, %v22_v1  ;;  %v25_v5 = vld [vmem:[%s414_s1 + $0x18] sm:$0xff]  ;;  %v26_v7 = vld [vmem:[%s414_s1 + $0x20] sm:$0xff]  ;;  %v27_v8 = vld [vmem:[%s414_s1 + $0x28] sm:$0xff]  ;;  %242 = vmatprep.mubr.msk.f32.mxu1 %vm290_vm1, %v291_v33 }
   0x3   :  { %v249_v6 = vpack.c.bf16 %v25_v5, %v24_v3  ;;  %v21_v9 = vld [vmem:[%s415_s0 + $0x8] sm:$0xff]  ;;  %v252_v10 = vpack.c.bf16 %v27_v8, %v26_v7  ;;  %v28_v11 = vld [vmem:[%s414_s1 + $0x30] sm:$0xff]  ;;  %v29_v12 = vld [vmem:[%s414_s1 + $0x38] sm:$0xff] }
   0x4   :  { %247 = vmatpush1.bf16.msra.mxu0 %v246_v4  ;;  %226 = vmatprep.mubr.msk.f32.mxu0 %vm47_vm0, %v21_v9  ;;  %v255_v13 = vpack.c.bf16 %v29_v12, %v28_v11  ;;  %v30_v14 = vld [vmem:[%s414_s1 + $0x40] sm:$0xff]  ;;  %v31_v15 = vld [vmem:[%s414_s1 + $0x48] sm:$0xff]  ;;  %v32_v17 = vld [vmem:[%s414_s1 + $0x50] sm:$0xff] }
   0x5   :  { %248 = vmatprep.subr.bf16.mxu0 %v289_v0  ;;  %v258_v16 = vpack.c.bf16 %v31_v15, %v30_v14  ;;  %v33_v18 = vld [vmem:[%s414_s1 + $0x58] sm:$0xff]  ;;  %v34_v20 = vld [vmem:[%s414_s1 + $0x60] sm:$0xff]  ;;  %v35_v21 = vld [vmem:[%s414_s1 + $0x68] sm:$0xff] }
   0x6   :  { %v261_v19 = vpack.c.bf16 %v33_v18, %v32_v17  ;;  %v264_v22 = vpack.c.bf16 %v35_v21, %v34_v20  ;;  %v36_v23 = vld [vmem:[%s414_s1 + $0x70] sm:$0xff]  ;;  %v37_v24 = vld [vmem:[%s414_s1 + $0x78] sm:$0xff]  ;;  %v38_v26 = vld [vmem:[%s414_s1 + $0x80] sm:$0xff] }
   0x7   :  { %v267_v25 = vpack.c.bf16 %v37_v24, %v36_v23  ;;  %v39_v27 = vld [vmem:[%s414_s1 + $0x88] sm:$0xff]  ;;  %v20_v29 = vld [vmem:[%s415_s0] sm:$0xff]  ;;  %v128_v32 = vld [vmem:[%s416_s3 + $0x10] sm:$0xff] }
   0x8   :  { %250 = vmatpush1.bf16.msra.mxu0 %v249_v6  ;;  %v270_v28 = vpack.c.bf16 %v39_v27, %v38_v26  ;;  %v126_v30 = vld [vmem:[%s416_s3] sm:$0xff]  ;;  %v127_v31 = vld [vmem:[%s416_s3 + $0x8] sm:$0xff]  ;;  %v129_v35 = vld [vmem:[%s416_s3 + $0x18] sm:$0xff] }
   0x9   :  { %251 = vmatprep.subr.bf16.mxu0 %v289_v0  ;;  %v273_v34 = vpack.c.bf16 %v127_v31, %v126_v30  ;;  %v276_v36 = vpack.c.bf16 %v129_v35, %v128_v32  ;;  %v225_v37 = vld [vmem:[%s417_s2] ss:$0 sm:$0xff] }
   0xa   :  { %v227_v46 = vld [vmem:[%s418_s4] ss:$0 sm:$0xff] }
   0xb   :  { %274 = vmatpush3.bf16.msra.mxu1 %v273_v34 }
   0xc   :  { %253 = vmatpush1.bf16.msra.mxu0 %v252_v10  ;;  %275 = vmatprep.subr.bf16.mxu1 %v289_v0 }
   0xd   :  { %254 = vmatprep.subr.bf16.mxu0 %v289_v0 }
   0xf   :  { %277 = vmatpush3.bf16.msra.mxu1 %v276_v36 }
  0x10   :  { %256 = vmatpush1.bf16.msra.mxu0 %v255_v13 }
  0x11   :  { %257 = vmatprep.subr.bf16.mxu0 %v289_v0 }
  0x14   :  { %259 = vmatpush1.bf16.msra.mxu0 %v258_v16 }
  0x15   :  { %260 = vmatprep.subr.bf16.mxu0 %v289_v0 }
  0x18   :  { %262 = vmatpush1.bf16.msra.mxu0 %v261_v19 }
  0x19   :  { %263 = vmatprep.subr.bf16.mxu0 %v289_v0 }
  0x1c   :  { %265 = vmatpush1.bf16.msra.mxu0 %v264_v22 }
  0x1d   :  { %266 = vmatprep.subr.bf16.mxu0 %v289_v0 }
  0x20   :  { %268 = vmatpush1.bf16.msra.mxu0 %v267_v25 }
  0x21   :  { %269 = vmatprep.subr.bf16.mxu0 %v289_v0 }
  0x24   :  { %271 = vmatpush1.bf16.msra.mxu0 %v270_v28 }
  0x27   :  { %116 = vmatmul.mubr.f32.vlgmr.msra.gmra.mrb[0].mxu0 %v20_v29 }
  0xfa   :  { %v117_v38 = vpop.f32.mrb[0].mxu0 }
  0xfb   :  { %v118_v39 = vadd.f32 %v225_v37, %v117_v38  ;;  %v119_v40 = vpop.f32.mrb[1].mxu0 }
  0xfd   :  { %v121_v41 = vsub.f32 0.0, %v118_v39 }
  0xff   :  { %v122_v42 = vmul.f32 1.442695, %v121_v41 }
 0x101   :  { %281 = vpow2.f32 %v122_v42 }
 0x10b   :  { %v282_v43 = vpop.eup %281 }
 0x10c   :  { %v124_v44 = vadd.f32 1.0, %v282_v43 }
 0x10e   :  { %283 = vrcp.f32 %v124_v44 }
 0x118   :  { %v284_v45 = vpop.eup %283 }
 0x119   :  { %243 = vmatmul.mubr.msk.f32.vlgmr.msra.gmra.mrb[0].mxu1 %vm137_vm2, %v284_v45 }
 0x1ec   :  { %v207_v47 = vpop.f32.mrb[0].mxu1 }
 0x1ed   :  { %v208_v48 = vadd.f32 %v227_v46, %v207_v47  ;;  %v244_v49 = vpop.f32.mrb[1].mxu1 }
 0x1ef   :  { %211 = vmax.xlane.f32.xlu0 %v208_v48 }
 0x27c   :  { %v212_v50 = vpop.xlane.xlu0 %211 }
 0x27d   :  { %v213_v51 = vsub.f32 %v208_v48, %v212_v50 }
 0x27f   :  { %v214_v52 = vmul.f32 1.442695, %v213_v51 }
 0x281   :  { %285 = vpow2.f32 %v214_v52 }
 0x28b   :  { %v286_v53 = vpop.eup %285 }
 0x28c   :  { %216 = vadd.xlane.f32.xlu0 %v286_v53 }
 0x319   :  { %v217_v54 = vpop.xlane.xlu0 %216 }
 0x31a   :  { %287 = vrcp.f32 %v217_v54 }
 0x324   :  { %v288_v55 = vpop.eup %287 }
 0x325   :  { %v219_v56 = vmul.f32 %v288_v55, %v286_v53 }
 0x327   :  { %220 = vst [vmem:[%s419_s5] sm:$0xff] %v219_v56 }

// kernel: network_forward.2
= control target key start
LH: loop header
LB: loop body
LE: loop exit
PB: predicated region body
PF: predicated region fallthrough
CT: control target
= control target key end

     0   :  { %vm163_vm0 = vcmask 1040384   ;;  %vm54_vm1 = vcmask 203776   ;;  %vm705_vm2 = vmmov 1   ;;  %vm500_vm4 = vcmask 31744   ;;  %s947_s1 = inlined_call_operand.vmem [shape: f32[25,4], index: 1, kind: input, shape index: {}]   ;;  %s948_s0 = inlined_call_operand.vmem [shape: f32[4,72,25], index: 0, kind: input, shape index: {}]   ;;  %s949_s2 = inlined_call_operand.vmem [shape: f32[1,4], index: 2, kind: input, shape index: {}]   ;;  %s950_s3 = inlined_call_operand.vmem [shape: f32[72,4], index: 3, kind: output, shape index: {}]  }
   0x1   :  { %v50_v0 = vld [vmem:[%s947_s1] sm:$0xff]  ;;  %v51_v1 = vld [vmem:[%s947_s1 + $0x8] sm:$0xff]  ;;  %v52_v2 = vld [vmem:[%s947_s1 + $0x10] sm:$0xff] }
   0x2   :  { %v654_v3 = vpack.c.bf16 %v51_v1, %v50_v0  ;;  %v53_v4 = vld [vmem:[%s947_s1 + $0x18] sm:$0x1]  ;;  %v14_v5 = vld [vmem:[%s948_s0] sm:$0xff]  ;;  %vm659_vm3 = vmpackc.low %vm163_vm0, %vm705_vm2 }
   0x3   :  { %v658_v6 = vpack.c.bf16 %v53_v4, %v52_v2  ;;  %600 = vmatprep.mubr.msk.f32.mxu0 %vm54_vm1, %v14_v5  ;;  %v32_v7 = vld [vmem:[%s948_s0 + $0x90] sm:$0xff]  ;;  %v15_v8 = vld [vmem:[%s948_s0 + $0x8] sm:$0xff]  ;;  %v33_v9 = vld [vmem:[%s948_s0 + $0x98] sm:$0xff] }
   0x4   :  { %655 = vmatprep.subr.bf16.mxu0 %v654_v3  ;;  %664 = vmatprep.subr.bf16.mxu1 %v654_v3  ;;  %v16_v10 = vld [vmem:[%s948_s0 + $0x10] sm:$0xff]  ;;  %v34_v11 = vld [vmem:[%s948_s0 + $0xa0] sm:$0xff]  ;;  %v17_v12 = vld [vmem:[%s948_s0 + $0x18] sm:$0xff] }
   0x5   :  { %657 = vmatpush3.bf16.msra.mxu0 %v654_v3  ;;  %666 = vmatpush3.bf16.msra.mxu1 %v654_v3  ;;  %v35_v13 = vld [vmem:[%s948_s0 + $0xa8] sm:$0xff]  ;;  %v18_v14 = vld [vmem:[%s948_s0 + $0x20] sm:$0xff]  ;;  %v36_v15 = vld [vmem:[%s948_s0 + $0xb0] sm:$0xff] }
   0x6   :  { %660 = vmatprep.subr.msk.bf16.mxu0 %vm659_vm3, %v658_v6  ;;  %665 = vmatprep.subr.msk.bf16.mxu1 %vm659_vm3, %v658_v6  ;;  %v19_v16 = vld [vmem:[%s948_s0 + $0x28] sm:$0xff]  ;;  %v37_v17 = vld [vmem:[%s948_s0 + $0xb8] sm:$0xff]  ;;  %v20_v18 = vld [vmem:[%s948_s0 + $0x30] sm:$0xff] }
   0x7   :  { %627 = vmatprep.mubr.msk.f32.mxu1 %vm54_vm1, %v32_v7  ;;  %v38_v19 = vld [vmem:[%s948_s0 + $0xc0] sm:$0xff]  ;;  %v21_v20 = vld [vmem:[%s948_s0 + $0x38] sm:$0xff]  ;;  %v39_v21 = vld [vmem:[%s948_s0 + $0xc8] sm:$0xff] }
   0x8   :  { %v22_v22 = vld [vmem:[%s948_s0 + $0x40] sm:$0xff]  ;;  %v40_v23 = vld [vmem:[%s948_s0 + $0xd0] sm:$0xff]  ;;  %v23_v24 = vld [vmem:[%s948_s0 + $0x48] sm:$0xff] }
   0x9   :  { %663 = vmatpush3.bf16.msk.msra.mxu0 %vm659_vm3, %v658_v6  ;;  %667 = vmatpush3.bf16.msk.msra.mxu1 %vm659_vm3, %v658_v6  ;;  %v41_v25 = vld [vmem:[%s948_s0 + $0xd8] sm:$0xff]  ;;  %v24_v26 = vld [vmem:[%s948_s0 + $0x50] sm:$0xff]  ;;  %v42_v27 = vld [vmem:[%s948_s0 + $0xe0] sm:$0xff] }
   0xa   :  { %v25_v28 = vld [vmem:[%s948_s0 + $0x58] sm:$0xff]  ;;  %v43_v29 = vld [vmem:[%s948_s0 + $0xe8] sm:$0xff]  ;;  %v26_v30 = vld [vmem:[%s948_s0 + $0x60] sm:$0xff] }
   0xb   :  { %v44_v31 = vld [vmem:[%s948_s0 + $0xf0] sm:$0xff]  ;;  %v27_v32 = vld [vmem:[%s948_s0 + $0x68] sm:$0xff]  ;;  %v45_v33 = vld [vmem:[%s948_s0 + $0xf8] sm:$0xff] }
   0xc   :  { %601 = vmatmul.mubr.msk.f32.vlgmr.msra.gmra.mrb[0].mxu0 %vm54_vm1, %v15_v8  ;;  %628 = vmatmul.mubr.msk.f32.vlgmr.msra.gmra.mrb[0].mxu1 %vm54_vm1, %v33_v9  ;;  %v28_v34 = vld [vmem:[%s948_s0 + $0x70] sm:$0xff]  ;;  %v46_v35 = vld [vmem:[%s948_s0 + $0x100] sm:$0xff]  ;;  %v29_v36 = vld [vmem:[%s948_s0 + $0x78] sm:$0xff] }
   0xd   :  { %603 = vmatprep.mubr.msk.f32.mxu0 %vm54_vm1, %v16_v10  ;;  %630 = vmatprep.mubr.msk.f32.mxu1 %vm54_vm1, %v34_v11  ;;  %v47_v37 = vld [vmem:[%s948_s0 + $0x108] sm:$0xff]  ;;  %v30_v38 = vld [vmem:[%s948_s0 + $0x80] sm:$0xff]  ;;  %v48_v39 = vld [vmem:[%s948_s0 + $0x110] sm:$0xff] }
   0xe   :  { %v31_v40 = vld [vmem:[%s948_s0 + $0x88] sm:$0xff]  ;;  %v49_v41 = vld [vmem:[%s948_s0 + $0x118] sm:$0xff]  ;;  %v895_v0 = vld [vmem:[%s949_s2] ss:$0 sm:$0xff] }
  0x10   :  { %604 = vmatmul.mubr.msk.f32.gmra.mrb[2].mxu0 %vm54_vm1, %v17_v12  ;;  %631 = vmatmul.mubr.msk.f32.gmra.mrb[2].mxu1 %vm54_vm1, %v35_v13 }
  0x11   :  { %606 = vmatprep.mubr.msk.f32.mxu0 %vm54_vm1, %v18_v14  ;;  %633 = vmatprep.mubr.msk.f32.mxu1 %vm54_vm1, %v36_v15 }
  0x14   :  { %607 = vmatmul.mubr.msk.f32.gmra.mrb[4].mxu0 %vm54_vm1, %v19_v16  ;;  %634 = vmatmul.mubr.msk.f32.gmra.mrb[4].mxu1 %vm54_vm1, %v37_v17 }
  0x15   :  { %609 = vmatprep.mubr.msk.f32.mxu0 %vm54_vm1, %v20_v18  ;;  %636 = vmatprep.mubr.msk.f32.mxu1 %vm54_vm1, %v38_v19 }
  0x18   :  { %610 = vmatmul.mubr.msk.f32.gmra.mrb[6].mxu0 %vm54_vm1, %v21_v20  ;;  %637 = vmatmul.mubr.msk.f32.gmra.mrb[6].mxu1 %vm54_vm1, %v39_v21 }
  0x19   :  { %612 = vmatprep.mubr.msk.f32.mxu0 %vm54_vm1, %v22_v22  ;;  %639 = vmatprep.mubr.msk.f32.mxu1 %vm54_vm1, %v40_v23 }
  0x1c   :  { %613 = vmatmul.mubr.msk.f32.gmra.mrb[8].mxu0 %vm54_vm1, %v23_v24  ;;  %640 = vmatmul.mubr.msk.f32.gmra.mrb[8].mxu1 %vm54_vm1, %v41_v25 }
  0x1d   :  { %615 = vmatprep.mubr.msk.f32.mxu0 %vm54_vm1, %v24_v26  ;;  %642 = vmatprep.mubr.msk.f32.mxu1 %vm54_vm1, %v42_v27 }
  0x20   :  { %616 = vmatmul.mubr.msk.f32.gmra.mrb[10].mxu0 %vm54_vm1, %v25_v28  ;;  %643 = vmatmul.mubr.msk.f32.gmra.mrb[10].mxu1 %vm54_vm1, %v43_v29 }
  0x21   :  { %618 = vmatprep.mubr.msk.f32.mxu0 %vm54_vm1, %v26_v30  ;;  %645 = vmatprep.mubr.msk.f32.mxu1 %vm54_vm1, %v44_v31 }
  0x24   :  { %619 = vmatmul.mubr.msk.f32.gmra.mrb[12].mxu0 %vm54_vm1, %v27_v32  ;;  %646 = vmatmul.mubr.msk.f32.gmra.mrb[12].mxu1 %vm54_vm1, %v45_v33 }
  0x25   :  { %621 = vmatprep.mubr.msk.f32.mxu0 %vm54_vm1, %v28_v34  ;;  %648 = vmatprep.mubr.msk.f32.mxu1 %vm54_vm1, %v46_v35 }
  0x28   :  { %622 = vmatmul.mubr.msk.f32.gmra.mrb[14].mxu0 %vm54_vm1, %v29_v36  ;;  %649 = vmatmul.mubr.msk.f32.gmra.mrb[14].mxu1 %vm54_vm1, %v47_v37 }
  0x29   :  { %624 = vmatprep.mubr.msk.f32.mxu0 %vm54_vm1, %v30_v38  ;;  %651 = vmatprep.mubr.msk.f32.mxu1 %vm54_vm1, %v48_v39 }
  0x2c   :  { %625 = vmatmul.mubr.msk.f32.gmra.mrb[16].mxu0 %vm54_vm1, %v31_v40  ;;  %652 = vmatmul.mubr.msk.f32.gmra.mrb[16].mxu1 %vm54_vm1, %v49_v41 }
  0xdf   :  { %v602_v42 = vpop.f32.mrb[0].mxu0  ;;  %v629_v43 = vpop.f32.mrb[0].mxu1 }
  0xe0   :  { %v233_v44 = vpop.f32.mrb[1].mxu0  ;;  %v323_v45 = vpop.f32.mrb[1].mxu1 }
  0xe3   :  { %v605_v46 = vpop.f32.mrb[2].mxu0  ;;  %v632_v47 = vpop.f32.mrb[2].mxu1 }
  0xe4   :  { %v243_v48 = vpop.f32.mrb[3].mxu0  ;;  %v333_v49 = vpop.f32.mrb[3].mxu1 }
  0xe7   :  { %v882_v50 = vpop.f32.mrb[4].mxu0  ;;  %v635_v51 = vpop.f32.mrb[4].mxu1 }
  0xe8   :  { %v253_v52 = vpop.f32.mrb[5].mxu0  ;;  %v343_v53 = vpop.f32.mrb[5].mxu1 }
  0xeb   :  { %v884_v54 = vpop.f32.mrb[6].mxu0  ;;  %v886_v55 = vpop.f32.mrb[6].mxu1 }
  0xec   :  { %v263_v56 = vpop.f32.mrb[7].mxu0  ;;  %v353_v57 = vpop.f32.mrb[7].mxu1 }
  0xef   :  { %v614_v58 = vpop.f32.mrb[8].mxu0  ;;  %v641_v59 = vpop.f32.mrb[8].mxu1 }
  0xf0   :  { %v412_v60 = vmax.f32 %v233_v44, %v614_v58  ;;  %v421_v61 = vmax.f32 %v323_v45, %v641_v59  ;;  %v888_v62 = vpop.f32.mrb[9].mxu0  ;;  %v890_v63 = vpop.f32.mrb[9].mxu1 }
  0xf2   :  { %v430_v1 = vmax.f32 %v412_v60, %v421_v61 }
  0xf3   :  { %v617_v2 = vpop.f32.mrb[10].mxu0  ;;  %v644_v3 = vpop.f32.mrb[10].mxu1 }
  0xf4   :  { %v446_v4 = vadd.f32 %v895_v0, %v430_v1  ;;  %v414_v5 = vmax.f32 %v243_v48, %v617_v2  ;;  %v423_v6 = vmax.f32 %v333_v49, %v644_v3  ;;  %v283_v7 = vpop.f32.mrb[11].mxu0  ;;  %v373_v8 = vpop.f32.mrb[11].mxu1 }
  0xf5   :  { %v413_v9 = vmax.f32 %v602_v42, %v283_v7  ;;  %v422_v10 = vmax.f32 %v629_v43, %v373_v8 }
  0xf6   :  { %v455_v11 = vsub.f32 0.0, %v446_v4  ;;  %v432_v12 = vmax.f32 %v414_v5, %v423_v6 }
  0xf7   :  { %v431_v13 = vmax.f32 %v413_v9, %v422_v10  ;;  %v620_v14 = vpop.f32.mrb[12].mxu0  ;;  %v647_v15 = vpop.f32.mrb[12].mxu1 }
  0xf8   :  { %v464_v16 = vmul.f32 1.442695, %v455_v11  ;;  %v448_v17 = vadd.f32 %v895_v0, %v432_v12  ;;  %v416_v18 = vmax.f32 %v253_v52, %v620_v14  ;;  %v425_v19 = vmax.f32 %v343_v53, %v647_v15  ;;  %v293_v20 = vpop.f32.mrb[13].mxu0  ;;  %v383_v21 = vpop.f32.mrb[13].mxu1 }
  0xf9   :  { %v447_v22 = vadd.f32 %v895_v0, %v431_v13  ;;  %v415_v23 = vmax.f32 %v605_v46, %v293_v20  ;;  %v424_v24 = vmax.f32 %v632_v47, %v383_v21 }
  0xfa   :  { %669 = vpow2.f32 %v464_v16  ;;  %v457_v25 = vsub.f32 0.0, %v448_v17  ;;  %v434_v26 = vmax.f32 %v416_v18, %v425_v19 }
  0xfb   :  { %v456_v27 = vsub.f32 0.0, %v447_v22  ;;  %v433_v28 = vmax.f32 %v415_v23, %v424_v24  ;;  %v623_v29 = vpop.f32.mrb[14].mxu0  ;;  %v650_v30 = vpop.f32.mrb[14].mxu1 }
  0xfc   :  { %v468_v31 = vmul.f32 1.442695, %v457_v25  ;;  %v450_v32 = vadd.f32 %v895_v0, %v434_v26  ;;  %v418_v33 = vmax.f32 %v263_v56, %v623_v29  ;;  %v427_v34 = vmax.f32 %v353_v57, %v650_v30  ;;  %v303_v35 = vpop.f32.mrb[15].mxu0  ;;  %v393_v36 = vpop.f32.mrb[15].mxu1 }
  0xfd   :  { %v466_v37 = vmul.f32 1.442695, %v456_v27  ;;  %v449_v38 = vadd.f32 %v895_v0, %v433_v28  ;;  %v417_v39 = vmax.f32 %v882_v50, %v303_v35  ;;  %v426_v40 = vmax.f32 %v635_v51, %v393_v36 }
  0xfe   :  { %671 = vpow2.f32 %v468_v31  ;;  %v459_v41 = vsub.f32 0.0, %v450_v32  ;;  %v436_v42 = vmax.f32 %v418_v33, %v427_v34 }
  0xff   :  { %673 = vpow2.f32 %v466_v37  ;;  %v458_v43 = vsub.f32 0.0, %v449_v38  ;;  %v435_v44 = vmax.f32 %v417_v39, %v426_v40  ;;  %v626_v45 = vpop.f32.mrb[16].mxu0  ;;  %v653_v46 = vpop.f32.mrb[16].mxu1 }
 0x100   :  { %v472_v47 = vmul.f32 1.442695, %v459_v41  ;;  %v452_v48 = vadd.f32 %v895_v0, %v436_v42  ;;  %v420_v49 = vmax.f32 %v888_v62, %v626_v45  ;;  %v429_v52 = vmax.f32 %v890_v63, %v653_v46  ;;  %v313_v53 = vpop.f32.mrb[17].mxu0  ;;  %v403_v56 = vpop.f32.mrb[17].mxu1 }
 0x101   :  { %v470_v57 = vmul.f32 1.442695, %v458_v43  ;;  %v451_v50 = vadd.f32 %v895_v0, %v435_v44  ;;  %v419_v51 = vmax.f32 %v884_v54, %v313_v53  ;;  %v428_v58 = vmax.f32 %v886_v55, %v403_v56 }
 0x102   :  { %675 = vpow2.f32 %v472_v47  ;;  %v461_v59 = vsub.f32 0.0, %v452_v48  ;;  %v438_v60 = vmax.f32 %v420_v49, %v429_v52 }
 0x103   :  { %677 = vpow2.f32 %v470_v57  ;;  %v460_v61 = vsub.f32 0.0, %v451_v50  ;;  %v437_v1 = vmax.f32 %v419_v51, %v428_v58 }
 0x104   :  { %v670_v2 = vpop.eup %669  ;;  %v476_v3 = vmul.f32 1.442695, %v461_v59  ;;  %v454_v62 = vadd.f32 %v895_v0, %v438_v60 }
 0x105   :  { %v482_v63 = vadd.f32 1.0, %v670_v2  ;;  %v474_v4 = vmul.f32 1.442695, %v460_v61  ;;  %v453_v5 = vadd.f32 %v895_v0, %v437_v1 }
 0x106   :  { %679 = vpow2.f32 %v476_v3  ;;  %v463_v6 = vsub.f32 0.0, %v454_v62 }
 0x107   :  { %681 = vrcp.f32 %v482_v63  ;;  %v462_v54 = vsub.f32 0.0, %v453_v5 }
 0x108   :  { %v672_v7 = vpop.eup %671  ;;  %683 = vpow2.f32 %v474_v4  ;;  %v480_v55 = vmul.f32 1.442695, %v463_v6 }
 0x109   :  { %v674_v8 = vpop.eup %673  ;;  %v484_v9 = vadd.f32 1.0, %v672_v7  ;;  %v478_v10 = vmul.f32 1.442695, %v462_v54 }
 0x10a   :  { %v483_v11 = vadd.f32 1.0, %v674_v8  ;;  %685 = vpow2.f32 %v480_v55 }
 0x10b   :  { %687 = vrcp.f32 %v484_v9 }
 0x10c   :  { %v676_v12 = vpop.eup %675  ;;  %689 = vrcp.f32 %v483_v11 }
 0x10d   :  { %v678_v13 = vpop.eup %677  ;;  %v486_v14 = vadd.f32 1.0, %v676_v12  ;;  %691 = vpow2.f32 %v478_v10 }
 0x10e   :  { %v485_v15 = vadd.f32 1.0, %v678_v13 }
 0x10f   :  { %693 = vrcp.f32 %v486_v14 }
 0x110   :  { %v680_v0 = vpop.eup %679  ;;  %695 = vrcp.f32 %v485_v15 }
 0x111   :  { %v682_v16 = vpop.eup %681  ;;  %v488_v17 = vadd.f32 1.0, %v680_v0 }
 0x112   :  { %v684_v18 = vpop.eup %683  ;;  %501 = vst.msk [vmem:[%s950_s3] sm:$0xff] %vm500_vm4, %v682_v16 }
 0x113   :  { %697 = vrcp.f32 %v488_v17  ;;  %v487_v19 = vadd.f32 1.0, %v684_v18 }
 0x114   :  { %v686_v20 = vpop.eup %685 }
 0x115   :  { %v688_v21 = vpop.eup %687  ;;  %699 = vrcp.f32 %v487_v19  ;;  %v490_v22 = vadd.f32 1.0, %v686_v20 }
 0x116   :  { %v690_v23 = vpop.eup %689  ;;  %503 = vst.msk [vmem:[%s950_s3 + $0x10] sm:$0xff] %vm500_vm4, %v688_v21 }
 0x117   :  { %v692_v24 = vpop.eup %691  ;;  %502 = vst.msk [vmem:[%s950_s3 + $0x8] sm:$0xff] %vm500_vm4, %v690_v23  ;;  %701 = vrcp.f32 %v490_v22 }
 0x118   :  { %v489_v25 = vadd.f32 1.0, %v692_v24 }
 0x119   :  { %v694_v26 = vpop.eup %693 }
 0x11a   :  { %v696_v27 = vpop.eup %695  ;;  %505 = vst.msk [vmem:[%s950_s3 + $0x20] sm:$0xff] %vm500_vm4, %v694_v26  ;;  %703 = vrcp.f32 %v489_v25 }
 0x11b   :  { %504 = vst.msk [vmem:[%s950_s3 + $0x18] sm:$0xff] %vm500_vm4, %v696_v27 }
 0x11d   :  { %v698_v28 = vpop.eup %697 }
 0x11e   :  { %507 = vst.msk [vmem:[%s950_s3 + $0x30] sm:$0xff] %vm500_vm4, %v698_v28 }
 0x11f   :  { %v700_v29 = vpop.eup %699 }
 0x120   :  { %506 = vst.msk [vmem:[%s950_s3 + $0x28] sm:$0xff] %vm500_vm4, %v700_v29 }
 0x121   :  { %v702_v30 = vpop.eup %701 }
 0x122   :  { %509 = vst.msk [vmem:[%s950_s3 + $0x40] sm:$0xff] %vm500_vm4, %v702_v30 }
 0x124   :  { %v704_v31 = vpop.eup %703 }
 0x125   :  { %508 = vst.msk [vmem:[%s950_s3 + $0x38] sm:$0xff] %vm500_vm4, %v704_v31 }

</bundles_post_ra>
